<compile_context>
chip_gen: v7x
topology: tpu7x:2x2x1
jax: 0.10.0
libtpu: 0.0.40
codegen_flags: <defaults>
</compile_context>

<pallas_src>
import functools

import jax
import jax.numpy as jnp
from jax.experimental import pallas as pl
from jax.experimental.pallas import tpu as pltpu

# ---- static problem dimensions (deterministic synthetic config) ----
BATCH          = 2
CONTEXT_DIM    = 16          # L
CONV_CHANNELS  = 4           # C
KERNEL_SIZE    = 4           # K
ACTION_DIM     = 3
MF_ACTIONS_DIM = 2
NUM_CELLS      = 32          # MLP default hidden width (depth 3 -> [32, 32, 32])
OUT_FEATURES   = 5

CONV_OUT_LEN = CONTEXT_DIM - KERNEL_SIZE + 1       # stride 1, no padding
CONV_FLAT    = CONV_CHANNELS * CONV_OUT_LEN        # conv_net.get_output_len(context_dim)
EXTRA_DIM    = ACTION_DIM + MF_ACTIONS_DIM
MLP_IN       = CONV_FLAT + EXTRA_DIM

COMB_IN   = CONTEXT_DIM + 1 + EXTRA_DIM + 2        # 16 + 1 (bias col) + 5 + pad = 24
COMB_OUT  = CONV_FLAT + 8                          # 52 conv lanes + 5 extras padded to 8 = 60
ROW_TILE  = 1024                                   # rows per grid step for large batches

_HI = jax.lax.Precision.HIGHEST


def _round_up(x, m):
    return ((x + m - 1) // m) * m


# ---------------------------------------------------------------------------
# Kernel: one row-tile of the full forward pass. All weights are whole-array
# VMEM blocks resident across the (parallel) row grid.
# ---------------------------------------------------------------------------
def actor_critic_kernel(inp_ref,     # (T, 24)   [context | 1 | action | mf | pad]
                        wcomb_ref,   # (24, 60)  Toeplitz conv + bias row + identity passthrough
                        w1_ref,      # (60, 32)  first MLP layer (conv rows + extra rows + pad)
                        wst_ref,     # (3, 32, 32)  [w2, w3, w4_pad]
                        bst_ref,     # (4, 32)      [b1, b2, b3, b4_pad]
                        out_ref):    # (T, 32)   padded output slab (first 5 cols valid)
    # Fused: Conv1d(1,C,K)+bias (Toeplitz) and [action|mf] passthrough in ONE matmul.
    h0 = jnp.dot(inp_ref[...], wcomb_ref[...],
                 preferred_element_type=jnp.float32, precision=_HI)      # (T, 60)

    # ReLU only on the conv lanes; passthrough extras stay linear (torch.cat semantics).
    lane = jax.lax.broadcasted_iota(jnp.int32, h0.shape, 1)
    h0 = jnp.where(lane < CONV_FLAT, jnp.maximum(h0, 0.0), h0)

    # Layer 1: Linear -> Tanh (single dot; extra/pad rows of w1 already packed in).
    h = jnp.tanh(jnp.dot(h0, w1_ref[...],
                         preferred_element_type=jnp.float32, precision=_HI)
                 + bst_ref[0:1, :])

    # Layers 2-3: Linear -> Tanh.
    h = jnp.tanh(jnp.dot(h, wst_ref[0],
                         preferred_element_type=jnp.float32, precision=_HI)
                 + bst_ref[1:2, :])
    h = jnp.tanh(jnp.dot(h, wst_ref[1],
                         preferred_element_type=jnp.float32, precision=_HI)
                 + bst_ref[2:3, :])

    # Linear head (activate_last_layer=False), padded to 32 output lanes.
    out_ref[...] = (jnp.dot(h, wst_ref[2],
                            preferred_element_type=jnp.float32, precision=_HI)
                    + bst_ref[3:4, :])


# ---------------------------------------------------------------------------
# One-time host-side parameter packing (hoisted out of the per-call path).
# Input params use the PyTorch (out, in) Linear convention.
# ---------------------------------------------------------------------------
def pack_params(p):
    # Toeplitz weight: Wtoe[l, c*Lout + t] = wconv[c, l - t] for 0 <= l - t < K.
    l_idx = jnp.arange(CONTEXT_DIM)[:, None]
    t_idx = jnp.arange(CONV_OUT_LEN)[None, :]
    diff = l_idx - t_idx
    valid = (diff >= 0) & (diff < KERNEL_SIZE)
    diff_c = jnp.clip(diff, 0, KERNEL_SIZE - 1)
    blocks = [jnp.where(valid, p["wconv"][c][diff_c], 0.0) for c in range(CONV_CHANNELS)]
    wtoe = jnp.concatenate(blocks, axis=1)                       # (L, C*Lout), channel-major
    btoe = jnp.repeat(p["bconv"], CONV_OUT_LEN)                  # (C*Lout,)

    # Combined first-stage weight: conv block, bias row (hits the ones column),
    # identity passthrough for [action | mf_actions].
    wcomb = jnp.zeros((COMB_IN, COMB_OUT), jnp.float32)
    wcomb = wcomb.at[:CONTEXT_DIM, :CONV_FLAT].set(wtoe)
    wcomb = wcomb.at[CONTEXT_DIM, :CONV_FLAT].set(btoe)
    wcomb = wcomb.at[CONTEXT_DIM + 1:CONTEXT_DIM + 1 + EXTRA_DIM,
                     CONV_FLAT:CONV_FLAT + EXTRA_DIM].set(
                         jnp.eye(EXTRA_DIM, dtype=jnp.float32))

    # Layer-1 weight re-packed to the fused 60-lane layout (pad rows are zero).
    w1_comb = jnp.zeros((COMB_OUT, NUM_CELLS), jnp.float32).at[:MLP_IN].set(p["w1"].T)

    # Head padded to 32 output lanes (cols >= 5 zero).
    w4_pad = jnp.zeros((NUM_CELLS, NUM_CELLS), jnp.float32).at[:, :OUT_FEATURES].set(
        p["w4"].T)
    b4_pad = jnp.zeros((NUM_CELLS,), jnp.float32).at[:OUT_FEATURES].set(p["b4"])

    w_stack = jnp.stack([p["w2"].T, p["w3"].T, w4_pad])          # (3, 32, 32)
    b_stack = jnp.stack([p["b1"], p["b2"], p["b3"], b4_pad])     # (4, 32)

    return {
        "wcomb":   wcomb.astype(jnp.float32),
        "w1_comb": w1_comb.astype(jnp.float32),
        "w_stack": w_stack.astype(jnp.float32),
        "b_stack": b_stack.astype(jnp.float32),
    }


# ---------------------------------------------------------------------------
# Forward wrapper: pads rows to a tile multiple, runs a 1-D parallel row grid.
# ---------------------------------------------------------------------------
@jax.jit
def build_conv_actor_critic(context, action, mf_actions, packed):
    b = context.shape[0]
    rows8 = _round_up(b, 8)
    # Ensure >= 2 grid steps whenever rows8 >= 16 so v7x's 2nd TensorCore isn't idle.
    tile = min(ROW_TILE, _round_up(-(-rows8 // 2), 8)) if rows8 >= 16 else rows8
    rows = _round_up(rows8, tile)

    # Single narrow per-row input: [context | 1 | action | mf | 0-pad] -> 24 lanes.
    comb_b = jnp.concatenate(
        [context.astype(jnp.float32),
         jnp.ones((b, 1), jnp.float32),
         action.astype(jnp.float32),
         mf_actions.astype(jnp.float32),
         jnp.zeros((b, COMB_IN - CONTEXT_DIM - 1 - EXTRA_DIM), jnp.float32)],
        axis=-1)
    comb = jnp.zeros((rows, COMB_IN), jnp.float32).at[:b].set(comb_b)

    grid = (rows // tile,)
    row_spec = lambda shape: pl.BlockSpec(shape, lambda i: (i, 0))
    fixed2 = lambda shape: pl.BlockSpec(shape, lambda i: (0, 0))

    out = pl.pallas_call(
        actor_critic_kernel,
        out_shape=jax.ShapeDtypeStruct((rows, NUM_CELLS), jnp.float32),
        grid=grid,
        in_specs=[
            row_spec((tile, COMB_IN)),                            # fused per-row input
            fixed2((COMB_IN, COMB_OUT)),                          # combined conv+passthrough W
            fixed2((COMB_OUT, NUM_CELLS)),                        # layer-1 weight
            pl.BlockSpec((3, NUM_CELLS, NUM_CELLS), lambda i: (0, 0, 0)),  # w2/w3/w4 stack
            fixed2((4, NUM_CELLS)),                               # bias stack
        ],
        out_specs=row_spec((tile, NUM_CELLS)),
        compiler_params=pltpu.CompilerParams(
            dimension_semantics=("parallel",)),                   # shard rows across TCs
    )(comb, packed["wcomb"], packed["w1_comb"], packed["w_stack"], packed["b_stack"])

    return out[:b, :OUT_FEATURES]


# ---------------------------------------------------------------------------
# Deterministic synthetic parameters (PyTorch (out, in) Linear convention).
# ---------------------------------------------------------------------------
def init_params(key):
    ks = jax.random.split(key, 10)
    s = 0.1
    return {
        "wconv": s * jax.random.normal(ks[0], (CONV_CHANNELS, KERNEL_SIZE), jnp.float32),
        "bconv": s * jax.random.normal(ks[1], (CONV_CHANNELS,), jnp.float32),
        "w1": s * jax.random.normal(ks[2], (NUM_CELLS, MLP_IN), jnp.float32),
        "b1": s * jax.random.normal(ks[3], (NUM_CELLS,), jnp.float32),
        "w2": s * jax.random.normal(ks[4], (NUM_CELLS, NUM_CELLS), jnp.float32),
        "b2": s * jax.random.normal(ks[5], (NUM_CELLS,), jnp.float32),
        "w3": s * jax.random.normal(ks[6], (NUM_CELLS, NUM_CELLS), jnp.float32),
        "b3": s * jax.random.normal(ks[7], (NUM_CELLS,), jnp.float32),
        "w4": s * jax.random.normal(ks[8], (OUT_FEATURES, NUM_CELLS), jnp.float32),
        "b4": s * jax.random.normal(ks[9], (OUT_FEATURES,), jnp.float32),
    }


def reference_forward(context, action, mf_actions, p):
    """Pure-JAX reference matching the PyTorch module semantics (elementwise conv)."""
    outs = []
    for c in range(CONV_CHANNELS):
        acc = jnp.zeros((context.shape[0], CONV_OUT_LEN), jnp.float32)
        for k in range(KERNEL_SIZE):
            acc = acc + context[:, k:k + CONV_OUT_LEN] * p["wconv"][c, k]
        outs.append(jnp.maximum(acc + p["bconv"][c], 0.0))
    hidden = jnp.concatenate(outs + [action, mf_actions], axis=-1)
    hidden = hidden[None]                                        # unsqueeze(0)
    h = jnp.tanh(hidden @ p["w1"].T + p["b1"])
    h = jnp.tanh(h @ p["w2"].T + p["b2"])
    h = jnp.tanh(h @ p["w3"].T + p["b3"])
    out = h @ p["w4"].T + p["b4"]
    return out[0]                                                # squeeze(0)


if __name__ == "__main__":
    key = jax.random.PRNGKey(0)
    k_ctx, k_act, k_mf, k_par = jax.random.split(key, 4)

    context    = jax.random.normal(k_ctx, (BATCH, CONTEXT_DIM), jnp.float32)
    action     = jax.random.normal(k_act, (BATCH, ACTION_DIM), jnp.float32)
    mf_actions = jax.random.normal(k_mf, (BATCH, MF_ACTIONS_DIM), jnp.float32)
    params = init_params(k_par)
    packed = jax.tree_util.tree_map(jax.block_until_ready, pack_params(params))

    out = build_conv_actor_critic(context, action, mf_actions, packed)
    out = jax.block_until_ready(out)

    ref = reference_forward(context, action, mf_actions, params)
    assert out.shape == (BATCH, OUT_FEATURES)
    assert jnp.allclose(out, ref, atol=1e-4, rtol=1e-4), (
        f"max abs err {jnp.max(jnp.abs(out - ref))}")
    print("KERNEL_OK")
</pallas_src>

<mosaic_0001>
module attributes {stable_mosaic.version = 11 : i64} {
  func.func @actor_critic_kernel(%arg0: i32, %arg1: memref<8x24xf32, #tpu.memory_space<vmem>>, %arg2: memref<24x60xf32, #tpu.memory_space<vmem>>, %arg3: memref<60x32xf32, #tpu.memory_space<vmem>>, %arg4: memref<3x32x32xf32, #tpu.memory_space<vmem>>, %arg5: memref<4x32xf32, #tpu.memory_space<vmem>>, %arg6: memref<8x32xf32, #tpu.memory_space<vmem>>) attributes {dimension_semantics = [#tpu.dimension_semantics<parallel>], iteration_bounds = array<i64: 1>, scalar_prefetch = 0 : i64, scratch_operands = 0 : i64, tpu.core_type = #tpu.core_type<tc>, window_params = [{transform_indices = @transform_0, window_bounds = array<i64: 8, 24>}, {pipeline_mode = #tpu.pipeline_mode<synchronous>, transform_indices = @transform_1, window_bounds = array<i64: 24, 60>}, {pipeline_mode = #tpu.pipeline_mode<synchronous>, transform_indices = @transform_2, window_bounds = array<i64: 60, 32>}, {pipeline_mode = #tpu.pipeline_mode<synchronous>, transform_indices = @transform_3, window_bounds = array<i64: 3, 32, 32>}, {pipeline_mode = #tpu.pipeline_mode<synchronous>, transform_indices = @transform_4, window_bounds = array<i64: 4, 32>}, {transform_indices = @transform_5, window_bounds = array<i64: 8, 32>}]} {
    %c0 = arith.constant 0 : index
    %c0_0 = arith.constant 0 : index
    %0 = vector.load %arg1[%c0, %c0_0] : memref<8x24xf32, #tpu.memory_space<vmem>>, vector<8x24xf32>
    %c0_1 = arith.constant 0 : index
    %c0_2 = arith.constant 0 : index
    %1 = vector.load %arg2[%c0_1, %c0_2] : memref<24x60xf32, #tpu.memory_space<vmem>>, vector<24x60xf32>
    %cst = arith.constant dense<0.000000e+00> : vector<8x60xf32>
    %2 = tpu.matmul %0, %1, %cst {dimension_numbers = #tpu.dot_dimension_numbers<[1], [0], [0], [1], [0, 0, 1, 1], [], []>, precision = #tpu.contract_precision<fp32>} : vector<8x24xf32>, vector<24x60xf32>, vector<8x60xf32> -> vector<8x60xf32>
    %3 = tpu.iota {dimensions = array<i32: 1>} : vector<8x60xi32>
    %c52_i32 = arith.constant 52 : i32
    %4 = vector.broadcast %c52_i32 : i32 to vector<8x60xi32>
    %5 = arith.cmpi slt, %3, %4 : vector<8x60xi32>
    %cst_3 = arith.constant 0.000000e+00 : f32
    %6 = vector.broadcast %cst_3 : f32 to vector<8x60xf32>
    %7 = arith.maximumf %2, %6 : vector<8x60xf32>
    %8 = arith.select %5, %7, %2 : vector<8x60xi1>, vector<8x60xf32>
    %c0_4 = arith.constant 0 : index
    %c0_5 = arith.constant 0 : index
    %9 = vector.load %arg3[%c0_4, %c0_5] : memref<60x32xf32, #tpu.memory_space<vmem>>, vector<60x32xf32>
    %cst_6 = arith.constant dense<0.000000e+00> : vector<8x32xf32>
    %10 = tpu.matmul %8, %9, %cst_6 {dimension_numbers = #tpu.dot_dimension_numbers<[1], [0], [0], [1], [0, 0, 1, 1], [], []>, precision = #tpu.contract_precision<fp32>} : vector<8x60xf32>, vector<60x32xf32>, vector<8x32xf32> -> vector<8x32xf32>
    %c0_7 = arith.constant 0 : index
    %c0_8 = arith.constant 0 : index
    %11 = vector.load %arg5[%c0_7, %c0_8] : memref<4x32xf32, #tpu.memory_space<vmem>>, vector<1x32xf32>
    %12 = vector.broadcast %11 : vector<1x32xf32> to vector<8x32xf32>
    %13 = arith.addf %10, %12 : vector<8x32xf32>
    %14 = math.tanh %13 : vector<8x32xf32>
    %c0_9 = arith.constant 0 : index
    %c0_10 = arith.constant 0 : index
    %c0_11 = arith.constant 0 : index
    %15 = vector.load %arg4[%c0_9, %c0_10, %c0_11] : memref<3x32x32xf32, #tpu.memory_space<vmem>>, vector<1x32x32xf32>
    %16 = vector.shape_cast %15 : vector<1x32x32xf32> to vector<32x32xf32>
    %cst_12 = arith.constant dense<0.000000e+00> : vector<8x32xf32>
    %17 = tpu.matmul %14, %16, %cst_12 {dimension_numbers = #tpu.dot_dimension_numbers<[1], [0], [0], [1], [0, 0, 1, 1], [], []>, precision = #tpu.contract_precision<fp32>} : vector<8x32xf32>, vector<32x32xf32>, vector<8x32xf32> -> vector<8x32xf32>
    %c1 = arith.constant 1 : index
    %c0_13 = arith.constant 0 : index
    %18 = vector.load %arg5[%c1, %c0_13] : memref<4x32xf32, #tpu.memory_space<vmem>>, vector<1x32xf32>
    %19 = vector.broadcast %18 : vector<1x32xf32> to vector<8x32xf32>
    %20 = arith.addf %17, %19 : vector<8x32xf32>
    %21 = math.tanh %20 : vector<8x32xf32>
    %c1_14 = arith.constant 1 : index
    %c0_15 = arith.constant 0 : index
    %c0_16 = arith.constant 0 : index
    %22 = vector.load %arg4[%c1_14, %c0_15, %c0_16] : memref<3x32x32xf32, #tpu.memory_space<vmem>>, vector<1x32x32xf32>
    %23 = vector.shape_cast %22 : vector<1x32x32xf32> to vector<32x32xf32>
    %cst_17 = arith.constant dense<0.000000e+00> : vector<8x32xf32>
    %24 = tpu.matmul %21, %23, %cst_17 {dimension_numbers = #tpu.dot_dimension_numbers<[1], [0], [0], [1], [0, 0, 1, 1], [], []>, precision = #tpu.contract_precision<fp32>} : vector<8x32xf32>, vector<32x32xf32>, vector<8x32xf32> -> vector<8x32xf32>
    %c2 = arith.constant 2 : index
    %c0_18 = arith.constant 0 : index
    %25 = vector.load %arg5[%c2, %c0_18] : memref<4x32xf32, #tpu.memory_space<vmem>>, vector<1x32xf32>
    %26 = vector.broadcast %25 : vector<1x32xf32> to vector<8x32xf32>
    %27 = arith.addf %24, %26 : vector<8x32xf32>
    %28 = math.tanh %27 : vector<8x32xf32>
    %c2_19 = arith.constant 2 : index
    %c0_20 = arith.constant 0 : index
    %c0_21 = arith.constant 0 : index
    %29 = vector.load %arg4[%c2_19, %c0_20, %c0_21] : memref<3x32x32xf32, #tpu.memory_space<vmem>>, vector<1x32x32xf32>
    %30 = vector.shape_cast %29 : vector<1x32x32xf32> to vector<32x32xf32>
    %cst_22 = arith.constant dense<0.000000e+00> : vector<8x32xf32>
    %31 = tpu.matmul %28, %30, %cst_22 {dimension_numbers = #tpu.dot_dimension_numbers<[1], [0], [0], [1], [0, 0, 1, 1], [], []>, precision = #tpu.contract_precision<fp32>} : vector<8x32xf32>, vector<32x32xf32>, vector<8x32xf32> -> vector<8x32xf32>
    %c3 = arith.constant 3 : index
    %c0_23 = arith.constant 0 : index
    %32 = vector.load %arg5[%c3, %c0_23] : memref<4x32xf32, #tpu.memory_space<vmem>>, vector<1x32xf32>
    %33 = vector.broadcast %32 : vector<1x32xf32> to vector<8x32xf32>
    %34 = arith.addf %31, %33 : vector<8x32xf32>
    %c0_24 = arith.constant 0 : index
    %c0_25 = arith.constant 0 : index
    %35 = vector.load %arg6[%c0_24, %c0_25] : memref<8x32xf32, #tpu.memory_space<vmem>>, vector<8x32xf32>
    tpu.vector_store %arg6[%c0_24, %c0_25], %34 {strides = array<i32>} : memref<8x32xf32, #tpu.memory_space<vmem>>, vector<8x32xf32>,
    return
  }
  func.func @transform_0(%arg0: i32) -> (i32, i32) {
    %c0_i32 = arith.constant 0 : i32
    %c0_i32_0 = arith.constant 0 : i32
    return %arg0, %c0_i32 : i32, i32
  }
  func.func @transform_1(%arg0: i32) -> (i32, i32) {
    %c0_i32 = arith.constant 0 : i32
    %c0_i32_0 = arith.constant 0 : i32
    %c0_i32_1 = arith.constant 0 : i32
    return %c0_i32, %c0_i32_0 : i32, i32
  }
  func.func @transform_2(%arg0: i32) -> (i32, i32) {
    %c0_i32 = arith.constant 0 : i32
    %c0_i32_0 = arith.constant 0 : i32
    %c0_i32_1 = arith.constant 0 : i32
    return %c0_i32, %c0_i32_0 : i32, i32
  }
  func.func @transform_3(%arg0: i32) -> (i32, i32, i32) {
    %c0_i32 = arith.constant 0 : i32
    %c0_i32_0 = arith.constant 0 : i32
    %c0_i32_1 = arith.constant 0 : i32
    %c0_i32_2 = arith.constant 0 : i32
    return %c0_i32, %c0_i32_0, %c0_i32_1 : i32, i32, i32
  }
  func.func @transform_4(%arg0: i32) -> (i32, i32) {
    %c0_i32 = arith.constant 0 : i32
    %c0_i32_0 = arith.constant 0 : i32
    %c0_i32_1 = arith.constant 0 : i32
    return %c0_i32, %c0_i32_0 : i32, i32
  }
  func.func @transform_5(%arg0: i32) -> (i32, i32) {
    %c0_i32 = arith.constant 0 : i32
    %c0_i32_0 = arith.constant 0 : i32
    return %arg0, %c0_i32 : i32, i32
  }
}

</mosaic_0001>

<bundles_post_ra>
// kernel: build_conv_actor_critic.1
= control target key start
LH: loop header
LB: loop body
LE: loop exit
PB: predicated region body
PF: predicated region fallthrough
CT: control target
= control target key end

     0   :  { %vm24_vm0 = vcmask 195584   ;;  %v3371_v0 = vmov 0.0|0.0   ;;  %vm3372_vm1 = vmmov 0   ;;  %v3373_v4 = vmov 0.0   ;;  %s3704_s1 = inlined_call_operand.vmem [shape: f32[24,60], index: 1, kind: input, shape index: {}]   ;;  %s3705_s0 = inlined_call_operand.vmem [shape: f32[8,24], index: 0, kind: input, shape index: {}]   ;;  %s3706_s2 = inlined_call_operand.vmem [shape: f32[60,32], index: 2, kind: input, shape index: {}]   ;;  %s3707_s3 = inlined_call_operand.vmem [shape: f32[3,32,32], index: 3, kind: input, shape index: {}]   ;;  %s3708_s4 = inlined_call_operand.vmem [shape: f32[4,32], index: 4, kind: input, shape index: {}]   ;;  %s3709_s5 = inlined_call_operand.vmem [shape: f32[8,32], index: 5, kind: output, shape index: {}]  }
   0x1   :  { %3111 = vmatprep.subr.bf16.mxu0 %v3371_v0  ;;  %v21_v1 = vld [vmem:[%s3704_s1] sm:$0xff]  ;;  %v22_v2 = vld [vmem:[%s3704_s1 + $0x8] sm:$0xff]  ;;  %v23_v3 = vld [vmem:[%s3704_s1 + $0x10] sm:$0xff]  ;;  %2751 = vmatprep.mubr.msk.f32.mxu0 %vm3372_vm1, %v3373_v4  ;;  %vm522_vm2 = vcmask 1043456   ;;  %vm518_vm4 = vcmask 490496   ;;  %vm1073_vm5 = vcmask 261120  }
   0x2   :  { %v29_v5 = vand.u32 4294901760, %v21_v1  ;;  %v32_v6 = vand.u32 4294901760, %v22_v2  ;;  %v3416_v7 = vand.u32 4294901760, %v23_v3  ;;  %v20_v8 = vld [vmem:[%s3705_s0] sm:$0xff]  ;;  %3129 = vmatprep.subr.bf16.mxu1 %v3371_v0  ;;  %v506_v10 = vld [vmem:[%s3706_s2 + $0x8] sm:$0xff]  ;;  %2815 = vmatprep.mubr.msk.f32.mxu1 %vm3372_vm1, %v3373_v4  ;;  %v507_v38 = vld [vmem:[%s3706_s2 + $0x10] sm:$0xff] }
   0x3   :  { %v505_v9 = vld [vmem:[%s3706_s2] sm:$0xff]  ;;  %v26_v11 = vsel %vm24_vm0, %v20_v8, 0  ;;  %v530_v13 = vand.u32 4294901760, %v506_v10  ;;  %v508_v39 = vld [vmem:[%s3706_s2 + $0x18] sm:$0xff]  ;;  %v533_v40 = vand.u32 4294901760, %v507_v38  ;;  %v510_v44 = vld [vmem:[%s3706_s2 + $0x28] sm:$0xff] }
   0x4   :  { %v527_v12 = vand.u32 4294901760, %v505_v9  ;;  %v3112_v14 = vpack.c.bf16 %v32_v6, %v29_v5  ;;  %v108_v15 = vsub.f32 %v21_v1, %v29_v5  ;;  %v115_v16 = vsub.f32 %v22_v2, %v32_v6  ;;  %v509_v43 = vld [vmem:[%s3706_s2 + $0x20] sm:$0xff]  ;;  %v512_v48 = vld [vmem:[%s3706_s2 + $0x38] sm:$0xf]  ;;  %v511_v49 = vld [vmem:[%s3706_s2 + $0x30] sm:$0xff] }
   0x5   :  { %v122_v17 = vsub.f32 %v23_v3, %v3416_v7  ;;  %v96_v18 = vand.u32 4294901760, %v26_v11  ;;  %v3436_v21 = vsub.f32 %v506_v10, %v530_v13  ;;  %v536_v41 = vand.u32 4294901760, %v508_v39 }
   0x6   :  { %v3432_v19 = vpack.c.bf16 %v530_v13, %v527_v12  ;;  %v3434_v20 = vsub.f32 %v505_v9, %v527_v12  ;;  %3113 = vmatpush3.bf16.msra.mxu0 %v3112_v14  ;;  %v109_v22 = vand.u32 4294901760, %v108_v15  ;;  %v116_v23 = vand.u32 4294901760, %v115_v16 }
   0x7   :  { %2749 = vmatprep.subr.mxu0 %v3373_v4  ;;  %v97_v24 = vsub.f32 %v26_v11, %v96_v18  ;;  %v123_v27 = vand.u32 4294901760, %v122_v17  ;;  %v3118_v36 = vpack.c.bf16 %v115_v16, %v108_v15  ;;  %v3473_v42 = vpack.c.bf16 %v536_v41, %v533_v40 }
   0x8   :  { %3131 = vmatpush3.bf16.msra.mxu1 %v3432_v19  ;;  %v110_v25 = vsub.f32 %v108_v15, %v109_v22  ;;  %v117_v26 = vsub.f32 %v115_v16, %v116_v23  ;;  %v3124_v37 = vpack.c.bf16 %v116_v23, %v109_v22  ;;  %v539_v45 = vand.u32 4294901760, %v509_v43 }
   0x9   :  { %3132 = vmatprep.subr.bf16.mxu1 %v3371_v0  ;;  %v98_v28 = vand.u32 4294901760, %v97_v24  ;;  %v124_v33 = vsub.f32 %v122_v17, %v123_v27  ;;  %v542_v46 = vand.u32 4294901760, %v510_v44  ;;  %v524_v50 = vsel %vm522_vm2, %v512_v48, 0 }
   0xa   :  { %2750 = vmatpush3.msra.mxu0 %v3416_v7  ;;  %v111_v29 = vand.u32 4294901760, %v110_v25  ;;  %v118_v30 = vand.u32 4294901760, %v117_v26  ;;  %v3491_v51 = vsub.f32 %v507_v38, %v533_v40  ;;  %v3493_v52 = vsub.f32 %v508_v39, %v536_v41 }
   0xb   :  { %v99_v31 = vsub.f32 %v97_v24, %v98_v28  ;;  %3114 = vmatprep.subr.bf16.mxu0 %v3371_v0  ;;  %v125_v35 = vand.u32 4294901760, %v124_v33  ;;  %v3483_v47 = vpack.c.bf16 %v542_v46, %v539_v45  ;;  %v3496_v53 = vsub.f32 %v509_v43, %v539_v45 }
   0xc   :  { %v3115_v32 = vpack.c.bf16 %v118_v30, %v111_v29  ;;  %3134 = vmatpush3.bf16.msra.mxu1 %v3473_v42  ;;  %v3498_v54 = vsub.f32 %v510_v44, %v542_v46  ;;  %v545_v55 = vand.u32 4294901760, %v511_v49  ;;  %v548_v56 = vand.u32 4294901760, %v524_v50 }
   0xd   :  { %v100_v34 = vand.u32 4294901760, %v99_v31  ;;  %3135 = vmatprep.subr.bf16.mxu1 %v3371_v0  ;;  %v612_v57 = vand.u32 4294901760, %v3434_v20  ;;  %v619_v58 = vand.u32 4294901760, %v3436_v21  ;;  %v626_v2 = vand.u32 4294901760, %v3491_v51 }
   0xe   :  { %v3503_v59 = vpack.c.bf16 %v548_v56, %v545_v55  ;;  %v3505_v60 = vsub.f32 %v511_v49, %v545_v55  ;;  %v3507_v61 = vsub.f32 %v524_v50, %v548_v56  ;;  %v633_v3 = vand.u32 4294901760, %v3493_v52  ;;  %v1066_v50 = vld [vmem:[%s3707_s3 + $0x10] sm:$0xff] }
   0xf   :  { %2752 = vmatmul.mubr.f32.vlgmr.msra.gmra.mrb[0].mxu0 %v100_v34  ;;  %v613_v62 = vsub.f32 %v3434_v20, %v612_v57  ;;  %v620_v63 = vsub.f32 %v3436_v21, %v619_v58  ;;  %v627_v6 = vsub.f32 %v3491_v51, %v626_v2  ;;  %v640_v11 = vand.u32 4294901760, %v3496_v53 }
  0x10   :  { %3116 = vmatpush3.bf16.msra.mxu0 %v3115_v32  ;;  %2760 = vmatprep.mubr.msk.f32.mxu0 %vm3372_vm1, %v3373_v4  ;;  %v647_v12 = vand.u32 4294901760, %v3498_v54  ;;  %v661_v22 = vand.u32 4294901760, %v3507_v61  ;;  %v3154_v29 = vpack.c.bf16 %v3436_v21, %v3434_v20  ;;  %v3157_v30 = vpack.c.bf16 %v3493_v52, %v3491_v51  ;;  %v1067_v51 = vld [vmem:[%s3707_s3 + $0x18] sm:$0xff] }
  0x11   :  { %2758 = vmatprep.subr.mxu0 %v3373_v4  ;;  %3137 = vmatpush3.bf16.msra.mxu1 %v3483_v47  ;;  %v614_v1 = vand.u32 4294901760, %v613_v62  ;;  %v621_v5 = vand.u32 4294901760, %v620_v63  ;;  %v628_v9 = vand.u32 4294901760, %v627_v6  ;;  %v3160_v31 = vpack.c.bf16 %v3498_v54, %v3496_v53 }
  0x12   :  { %3138 = vmatprep.subr.bf16.mxu1 %v3371_v0  ;;  %v648_v15 = vsub.f32 %v3498_v54, %v647_v12  ;;  %v662_v25 = vsub.f32 %v3507_v61, %v661_v22  ;;  %v3163_v32 = vpack.c.bf16 %v3507_v61, %v3505_v60  ;;  %v3178_v33 = vpack.c.bf16 %v619_v58, %v612_v57 }
  0x13   :  { %v3142_v8 = vpack.c.bf16 %v621_v5, %v614_v1  ;;  %v3181_v34 = vpack.c.bf16 %v633_v3, %v626_v2  ;;  %v1084_v55 = vand.u32 4294901760, %v1066_v50  ;;  %v1087_v56 = vand.u32 4294901760, %v1067_v51 }
  0x14   :  { %2759 = vmatpush3.msra.mxu0 %v125_v35  ;;  %v3184_v35 = vpack.c.bf16 %v647_v12, %v640_v11 }
  0x15   :  { %3117 = vmatprep.subr.bf16.mxu0 %v3371_v0  ;;  %3140 = vmatpush3.bf16.msra.mxu1 %v3503_v59  ;;  %v1172_v57 = vsub.f32 %v1066_v50, %v1084_v55  ;;  %v1179_v61 = vsub.f32 %v1067_v51, %v1087_v56 }
  0x16   :  { %3141 = vmatprep.subr.bf16.mxu1 %v3371_v0 }
  0x17   :  { %2761 = vmatmul.mubr.f32.vlgmr.msra.gmra.mrb[0].mxu0 %v96_v18  ;;  %v1180_v5 = vand.u32 4294901760, %v1179_v61 }
  0x18   :  { %3119 = vmatpush3.bf16.msra.mxu0 %v3118_v36  ;;  %2769 = vmatprep.mubr.msk.f32.mxu0 %vm3372_vm1, %v3373_v4 }
  0x19   :  { %2767 = vmatprep.subr.mxu0 %v3373_v4 }
  0x1c   :  { %2768 = vmatpush3.msra.mxu0 %v122_v17  ;;  %v649_v17 = vand.u32 4294901760, %v648_v15 }
  0x1d   :  { %3120 = vmatprep.subr.bf16.mxu0 %v3371_v0 }
  0x1f   :  { %2770 = vmatmul.mubr.f32.vlgmr.msra.gmra.mrb[0].mxu0 %v97_v24 }
  0x20   :  { %3122 = vmatpush3.bf16.msra.mxu0 %v3112_v14  ;;  %2778 = vmatprep.mubr.msk.f32.mxu0 %vm3372_vm1, %v3373_v4 }
  0x21   :  { %2776 = vmatprep.subr.mxu0 %v3373_v4 }
  0x24   :  { %2777 = vmatpush3.msra.mxu0 %v3416_v7 }
  0x25   :  { %3123 = vmatprep.subr.bf16.mxu0 %v3371_v0 }
  0x27   :  { %2779 = vmatmul.mubr.f32.vlgmr.msra.gmra.mrb[0].mxu0 %v98_v28 }
  0x28   :  { %3125 = vmatpush3.bf16.msra.mxu0 %v3124_v37  ;;  %2787 = vmatprep.mubr.msk.f32.mxu0 %vm3372_vm1, %v3373_v4  ;;  %v500_v37 = vlaneseq }
  0x29   :  { %2785 = vmatprep.subr.mxu0 %v3373_v4 }
  0x2a   :  { %v501_v38 = vand.u32 127, %v500_v37 }
  0x2c   :  { %2786 = vmatpush3.msra.mxu0 %v123_v27  ;;  %v663_v27 = vand.u32 4294901760, %v662_v25  ;;  %vm502_vm3 = vcmp.lt.s32.totalorder %v501_v38, 52 }
  0x2d   :  { %3126 = vmatprep.subr.bf16.mxu0 %v3371_v0 }
  0x2f   :  { %2788 = vmatmul.mubr.f32.vlgmr.msra.gmra.mrb[0].mxu0 %v96_v18 }
  0x30   :  { %3128 = vmatpush3.bf16.msra.mxu0 %v3112_v14  ;;  %2796 = vmatprep.mubr.msk.f32.mxu0 %vm3372_vm1, %v3373_v4  ;;  %v641_v14 = vsub.f32 %v3496_v53, %v640_v11 }
  0x31   :  { %2794 = vmatprep.subr.mxu0 %v3373_v4 }
  0x32   :  { %v642_v16 = vand.u32 4294901760, %v641_v14 }
  0x34   :  { %2795 = vmatpush3.msra.mxu0 %v3416_v7  ;;  %v634_v7 = vsub.f32 %v3493_v52, %v633_v3  ;;  %v3148_v23 = vpack.c.bf16 %v649_v17, %v642_v16  ;;  %v1173_v3 = vand.u32 4294901760, %v1172_v57  ;;  %v2565_v16 = vld [vmem:[%s3708_s4] ss:$0 sm:$0xff] }
  0x35   :  { %3201 = vmatprep.subr.bf16.mxu0 %v3371_v0 }
  0x36   :  { %v635_v10 = vand.u32 4294901760, %v634_v7  ;;  %v1174_v7 = vsub.f32 %v1172_v57, %v1173_v3  ;;  %v3229_v15 = vpack.c.bf16 %v1180_v5, %v1173_v3 }
  0x37   :  { %2797 = vmatmul.mubr.f32.vlgmr.msra.gmra.mrb[0].mxu0 %v96_v18  ;;  %v654_v18 = vand.u32 4294901760, %v3505_v60 }
  0x38   :  { %2921 = vmatprep.mubr.msk.f32.mxu0 %vm3372_vm1, %v3373_v4  ;;  %v3145_v13 = vpack.c.bf16 %v635_v10, %v628_v9  ;;  %v1175_v9 = vand.u32 4294901760, %v1174_v7 }
  0x39   :  { %v655_v24 = vsub.f32 %v3505_v60, %v654_v18  ;;  %v3187_v36 = vpack.c.bf16 %v661_v22, %v654_v18  ;;  %v3205_v60 = vpack.c.bf16 %v1087_v56, %v1084_v55 }
  0x3b   :  { %v656_v26 = vand.u32 4294901760, %v655_v24 }
  0x3d   :  { %v3151_v28 = vpack.c.bf16 %v663_v27, %v656_v26 }
 0x10a   :  { %v496_v39 = vpop.f32.mrb[0].mxu0 }
 0x10b   :  { %v503_v40 = vmax.f32 %v496_v39, 0.0  ;;  %v2798_v20 = vpop.f32.mrb[1].mxu0 }
 0x10d   :  { %v504_v21 = vsel %vm502_vm3, %v503_v40, %v496_v39 }
 0x10e   :  { %v520_v41 = vsel %vm518_vm4, %v504_v21, 0 }
 0x10f   :  { %v599_v43 = vand.u32 4294901760, %v520_v41 }
 0x111   :  { %v600_v44 = vsub.f32 %v520_v41, %v599_v43 }
 0x113   :  { %v601_v45 = vand.u32 4294901760, %v600_v44 }
 0x115   :  { %v602_v46 = vsub.f32 %v600_v44, %v601_v45 }
 0x117   :  { %v603_v48 = vand.u32 4294901760, %v602_v46 }
 0x119   :  { %2816 = vmatmul.mubr.f32.vlgmr.msra.gmra.mrb[0].mxu1 %v603_v48 }
 0x11a   :  { %3143 = vmatpush3.bf16.msra.mxu1 %v3142_v8  ;;  %2834 = vmatprep.mubr.msk.f32.mxu1 %vm3372_vm1, %v3373_v4  ;;  %v1181_v8 = vsub.f32 %v1179_v61, %v1180_v5 }
 0x11b   :  { %3144 = vmatprep.subr.bf16.mxu1 %v3371_v0 }
 0x11c   :  { %v1182_v10 = vand.u32 4294901760, %v1181_v8  ;;  %v2572_v8 = vld [vmem:[%s3707_s3 + $0x40] sm:$0xff] }
 0x11e   :  { %3146 = vmatpush3.bf16.msra.mxu1 %v3145_v13  ;;  %v3211_v11 = vpack.c.bf16 %v1182_v10, %v1175_v9  ;;  %v3217_v13 = vpack.c.bf16 %v1179_v61, %v1172_v57  ;;  %v2573_v9 = vld [vmem:[%s3707_s3 + $0x48] sm:$0xff]  ;;  %v2076_v10 = vand.u32 4294901760, %v2572_v8 }
 0x11f   :  { %3147 = vmatprep.subr.bf16.mxu1 %v3371_v0 }
 0x122   :  { %3149 = vmatpush3.bf16.msra.mxu1 %v3148_v23 }
 0x123   :  { %3150 = vmatprep.subr.bf16.mxu1 %v3371_v0 }
 0x126   :  { %3152 = vmatpush3.bf16.msra.mxu1 %v3151_v28 }
 0x127   :  { %3153 = vmatprep.subr.bf16.mxu1 %v3371_v0 }
 0x129   :  { %2835 = vmatmul.mubr.f32.vlgmr.msra.gmra.mrb[0].mxu1 %v599_v43 }
 0x12a   :  { %3155 = vmatpush3.bf16.msra.mxu1 %v3154_v29  ;;  %2853 = vmatprep.mubr.msk.f32.mxu1 %vm3372_vm1, %v3373_v4 }
 0x12b   :  { %3156 = vmatprep.subr.bf16.mxu1 %v3371_v0 }
 0x12e   :  { %3158 = vmatpush3.bf16.msra.mxu1 %v3157_v30  ;;  %v2567_v30 = vld [vmem:[%s3707_s3 + $0x20] sm:$0xff] }
 0x12f   :  { %3159 = vmatprep.subr.bf16.mxu1 %v3371_v0 }
 0x132   :  { %3161 = vmatpush3.bf16.msra.mxu1 %v3160_v31  ;;  %v2568_v31 = vld [vmem:[%s3707_s3 + $0x28] sm:$0xff] }
 0x133   :  { %3162 = vmatprep.subr.bf16.mxu1 %v3371_v0 }
 0x136   :  { %3164 = vmatpush3.bf16.msra.mxu1 %v3163_v32  ;;  %v1577_v32 = vand.u32 4294901760, %v2567_v30 }
 0x137   :  { %3165 = vmatprep.subr.bf16.mxu1 %v3371_v0 }
 0x138   :  { %v1657_v37 = vsub.f32 %v2567_v30, %v1577_v32 }
 0x139   :  { %2854 = vmatmul.mubr.f32.vlgmr.msra.gmra.mrb[0].mxu1 %v600_v44 }
 0x13a   :  { %3167 = vmatpush3.bf16.msra.mxu1 %v3432_v19  ;;  %2872 = vmatprep.mubr.msk.f32.mxu1 %vm3372_vm1, %v3373_v4  ;;  %v1658_v21 = vand.u32 4294901760, %v1657_v37 }
 0x13b   :  { %3168 = vmatprep.subr.bf16.mxu1 %v3371_v0 }
 0x13e   :  { %3170 = vmatpush3.bf16.msra.mxu1 %v3473_v42 }
 0x13f   :  { %3171 = vmatprep.subr.bf16.mxu1 %v3371_v0 }
 0x142   :  { %3173 = vmatpush3.bf16.msra.mxu1 %v3483_v47 }
 0x143   :  { %3174 = vmatprep.subr.bf16.mxu1 %v3371_v0 }
 0x146   :  { %3176 = vmatpush3.bf16.msra.mxu1 %v3503_v59 }
 0x147   :  { %3177 = vmatprep.subr.bf16.mxu1 %v3371_v0 }
 0x149   :  { %2873 = vmatmul.mubr.f32.vlgmr.msra.gmra.mrb[0].mxu1 %v601_v45  ;;  %v1659_v45 = vsub.f32 %v1657_v37, %v1658_v21 }
 0x14a   :  { %3179 = vmatpush3.bf16.msra.mxu1 %v3178_v33  ;;  %2891 = vmatprep.mubr.msk.f32.mxu1 %vm3372_vm1, %v3373_v4  ;;  %v1580_v33 = vand.u32 4294901760, %v2568_v31 }
 0x14b   :  { %3180 = vmatprep.subr.bf16.mxu1 %v3371_v0  ;;  %v1660_v48 = vand.u32 4294901760, %v1659_v45 }
 0x14c   :  { %v1664_v38 = vsub.f32 %v2568_v31, %v1580_v33 }
 0x14e   :  { %3182 = vmatpush3.bf16.msra.mxu1 %v3181_v34  ;;  %v2569_v34 = vld [vmem:[%s3707_s3 + $0x30] sm:$0xff]  ;;  %v1665_v41 = vand.u32 4294901760, %v1664_v38  ;;  %v3250_v55 = vpack.c.bf16 %v1664_v38, %v1657_v37 }
 0x14f   :  { %3183 = vmatprep.subr.bf16.mxu1 %v3371_v0  ;;  %v1583_v39 = vand.u32 4294901760, %v2569_v34 }
 0x150   :  { %v1666_v46 = vsub.f32 %v1664_v38, %v1665_v41  ;;  %v3262_v57 = vpack.c.bf16 %v1665_v41, %v1658_v21  ;;  %v2571_v41 = vld [vmem:[%s3708_s4 + $0x2] ss:$0 sm:$0xff] }
 0x151   :  { %v1671_v20 = vsub.f32 %v2569_v34, %v1583_v39 }
 0x152   :  { %3185 = vmatpush3.bf16.msra.mxu1 %v3184_v35  ;;  %v2570_v35 = vld [vmem:[%s3707_s3 + $0x38] sm:$0xff] }
 0x153   :  { %3186 = vmatprep.subr.bf16.mxu1 %v3371_v0  ;;  %v1586_v40 = vand.u32 4294901760, %v2570_v35 }
 0x155   :  { %v1678_v44 = vsub.f32 %v2570_v35, %v1586_v40 }
 0x156   :  { %3188 = vmatpush3.bf16.msra.mxu1 %v3187_v36  ;;  %v3630_v36 = vpack.c.bf16 %v1580_v33, %v1577_v32 }
 0x157   :  { %3189 = vmatprep.subr.bf16.mxu1 %v3371_v0  ;;  %v3253_v56 = vpack.c.bf16 %v1678_v44, %v1671_v20 }
 0x159   :  { %2892 = vmatmul.mubr.f32.vlgmr.msra.gmra.mrb[0].mxu1 %v599_v43 }
 0x15a   :  { %3191 = vmatpush3.bf16.msra.mxu1 %v3432_v19  ;;  %2910 = vmatprep.mubr.msk.f32.mxu1 %vm3372_vm1, %v3373_v4  ;;  %v1064_v19 = vld [vmem:[%s3707_s3] sm:$0xff] }
 0x15b   :  { %3192 = vmatprep.subr.bf16.mxu1 %v3371_v0  ;;  %v1078_v49 = vand.u32 4294901760, %v1064_v19 }
 0x15d   :  { %v1158_v53 = vsub.f32 %v1064_v19, %v1078_v49  ;;  %v1667_v19 = vand.u32 4294901760, %v1666_v46 }
 0x15e   :  { %3194 = vmatpush3.bf16.msra.mxu1 %v3473_v42  ;;  %v1065_v42 = vld [vmem:[%s3707_s3 + $0x8] sm:$0xff] }
 0x15f   :  { %3195 = vmatprep.subr.bf16.mxu1 %v3371_v0  ;;  %v1159_v58 = vand.u32 4294901760, %v1158_v53 }
 0x161   :  { %v1160_v62 = vsub.f32 %v1158_v53, %v1159_v58 }
 0x162   :  { %3197 = vmatpush3.bf16.msra.mxu1 %v3483_v47  ;;  %v1081_v47 = vand.u32 4294901760, %v1065_v42 }
 0x163   :  { %3198 = vmatprep.subr.bf16.mxu1 %v3371_v0  ;;  %v1161_v1 = vand.u32 4294901760, %v1160_v62 }
 0x164   :  { %v3585_v52 = vpack.c.bf16 %v1081_v47, %v1078_v49  ;;  %v1165_v54 = vsub.f32 %v1065_v42, %v1081_v47  ;;  %v1672_v42 = vand.u32 4294901760, %v1671_v20  ;;  %v1679_v49 = vand.u32 4294901760, %v1678_v44 }
 0x165   :  { %v3244_v47 = vpack.c.bf16 %v1667_v19, %v1660_v48 }
 0x166   :  { %3200 = vmatpush3.bf16.msra.mxu1 %v3503_v59  ;;  %3203 = vmatpush3.bf16.msra.mxu0 %v3585_v52  ;;  %v1166_v59 = vand.u32 4294901760, %v1165_v54  ;;  %v3214_v12 = vpack.c.bf16 %v1165_v54, %v1158_v53  ;;  %v1673_v50 = vsub.f32 %v1671_v20, %v1672_v42  ;;  %v1680_v51 = vsub.f32 %v1678_v44, %v1679_v49 }
 0x167   :  { %3279 = vmatprep.subr.bf16.mxu1 %v3371_v0  ;;  %3204 = vmatprep.subr.bf16.mxu0 %v3371_v0 }
 0x168   :  { %v1167_v63 = vsub.f32 %v1165_v54, %v1166_v59  ;;  %v3226_v14 = vpack.c.bf16 %v1166_v59, %v1159_v58  ;;  %v1681_v53 = vand.u32 4294901760, %v1680_v51  ;;  %v3265_v58 = vpack.c.bf16 %v1679_v49, %v1672_v42  ;;  %v2566_v59 = vld [vmem:[%s3708_s4 + $0x1] ss:$0 sm:$0xff] }
 0x169   :  { %2911 = vmatmul.mubr.f32.vlgmr.msra.gmra.mrb[0].mxu1 %v599_v43  ;;  %v3241_v43 = vpack.c.bf16 %v1586_v40, %v1583_v39 }
 0x16a   :  { %3064 = vmatprep.mubr.msk.f32.mxu1 %vm3372_vm1, %v3373_v4  ;;  %3206 = vmatpush3.bf16.msra.mxu0 %v3205_v60  ;;  %v1168_v2 = vand.u32 4294901760, %v1167_v63 }
 0x16b   :  { %3207 = vmatprep.subr.bf16.mxu0 %v3371_v0 }
 0x16c   :  { %v3208_v6 = vpack.c.bf16 %v1168_v2, %v1161_v1 }
 0x23c   :  { %v1059_v17 = vpop.f32.mrb[0].mxu1 }
 0x23d   :  { %v3309_v18 = vadd.f32 %v2565_v16, %v1059_v17  ;;  %v2912_v22 = vpop.f32.mrb[1].mxu1 }
 0x23f   :  { %3365 = vtanh.f32 %v3309_v18 }
 0x249   :  { %v3366_v23 = vpop.eup %3365 }
 0x24a   :  { %v1075_v24 = vsel %vm1073_vm5, %v3366_v23, 0 }
 0x24b   :  { %v1146_v25 = vand.u32 4294901760, %v1075_v24 }
 0x24d   :  { %v1147_v26 = vsub.f32 %v1075_v24, %v1146_v25 }
 0x24f   :  { %v1148_v27 = vand.u32 4294901760, %v1147_v26 }
 0x251   :  { %v1149_v28 = vsub.f32 %v1147_v26, %v1148_v27 }
 0x253   :  { %v1150_v29 = vand.u32 4294901760, %v1149_v28 }
 0x255   :  { %2922 = vmatmul.mubr.f32.vlgmr.msra.gmra.mrb[2].mxu0 %v1150_v29 }
 0x256   :  { %3209 = vmatpush3.bf16.msra.mxu0 %v3208_v6  ;;  %2932 = vmatprep.mubr.msk.f32.mxu0 %vm3372_vm1, %v3373_v4 }
 0x257   :  { %3210 = vmatprep.subr.bf16.mxu0 %v3371_v0 }
 0x25a   :  { %3212 = vmatpush3.bf16.msra.mxu0 %v3211_v11  ;;  %v2079_v11 = vand.u32 4294901760, %v2573_v9 }
 0x25b   :  { %3213 = vmatprep.subr.bf16.mxu0 %v3371_v0 }
 0x25c   :  { %v3274_v37 = vpack.c.bf16 %v2079_v11, %v2076_v10 }
 0x25d   :  { %2933 = vmatmul.mubr.f32.vlgmr.msra.gmra.mrb[2].mxu0 %v1146_v25 }
 0x25e   :  { %3215 = vmatpush3.bf16.msra.mxu0 %v3214_v12  ;;  %2943 = vmatprep.mubr.msk.f32.mxu0 %vm3372_vm1, %v3373_v4  ;;  %v2156_v12 = vsub.f32 %v2572_v8, %v2076_v10 }
 0x25f   :  { %3216 = vmatprep.subr.bf16.mxu0 %v3371_v0 }
 0x260   :  { %v2157_v16 = vand.u32 4294901760, %v2156_v12 }
 0x262   :  { %3218 = vmatpush3.bf16.msra.mxu0 %v3217_v13  ;;  %v2163_v13 = vsub.f32 %v2573_v9, %v2079_v11  ;;  %v2158_v23 = vsub.f32 %v2156_v12, %v2157_v16 }
 0x263   :  { %3219 = vmatprep.subr.bf16.mxu0 %v3371_v0 }
 0x264   :  { %v2164_v17 = vand.u32 4294901760, %v2163_v13  ;;  %v3286_v38 = vpack.c.bf16 %v2163_v13, %v2156_v12 }
 0x265   :  { %2944 = vmatmul.mubr.f32.vlgmr.msra.gmra.mrb[2].mxu0 %v1147_v26 }
 0x266   :  { %3221 = vmatpush3.bf16.msra.mxu0 %v3585_v52  ;;  %2954 = vmatprep.mubr.msk.f32.mxu0 %vm3372_vm1, %v3373_v4  ;;  %v2165_v24 = vsub.f32 %v2163_v13, %v2164_v17  ;;  %v3298_v20 = vpack.c.bf16 %v2164_v17, %v2157_v16 }
 0x267   :  { %3222 = vmatprep.subr.bf16.mxu0 %v3371_v0 }
 0x268   :  { %v2166_v28 = vand.u32 4294901760, %v2165_v24 }
 0x26a   :  { %3224 = vmatpush3.bf16.msra.mxu0 %v3205_v60 }
 0x26b   :  { %3225 = vmatprep.subr.bf16.mxu0 %v3371_v0 }
 0x26d   :  { %2955 = vmatmul.mubr.f32.vlgmr.msra.gmra.mrb[2].mxu0 %v1148_v27  ;;  %v2159_v27 = vand.u32 4294901760, %v2158_v23 }
 0x26e   :  { %3227 = vmatpush3.bf16.msra.mxu0 %v3226_v14  ;;  %2965 = vmatprep.mubr.msk.f32.mxu0 %vm3372_vm1, %v3373_v4  ;;  %v2574_v14 = vld [vmem:[%s3707_s3 + $0x50] sm:$0xff] }
 0x26f   :  { %3228 = vmatprep.subr.bf16.mxu0 %v3371_v0  ;;  %v2082_v18 = vand.u32 4294901760, %v2574_v14  ;;  %v3280_v31 = vpack.c.bf16 %v2166_v28, %v2159_v27 }
 0x271   :  { %3281 = vmatpush3.bf16.msra.mxu1 %v3280_v31 }
 0x272   :  { %3230 = vmatpush3.bf16.msra.mxu0 %v3229_v15  ;;  %v2575_v15 = vld [vmem:[%s3707_s3 + $0x58] sm:$0xff]  ;;  %3282 = vmatprep.subr.bf16.mxu1 %v3371_v0 }
 0x273   :  { %3231 = vmatprep.subr.bf16.mxu0 %v3371_v0  ;;  %v2085_v22 = vand.u32 4294901760, %v2575_v15 }
 0x275   :  { %2966 = vmatmul.mubr.f32.vlgmr.msra.gmra.mrb[2].mxu0 %v1146_v25  ;;  %v2177_v26 = vsub.f32 %v2575_v15, %v2085_v22  ;;  %v3277_v39 = vpack.c.bf16 %v2085_v22, %v2082_v18 }
 0x276   :  { %3233 = vmatpush3.bf16.msra.mxu0 %v3585_v52  ;;  %2976 = vmatprep.mubr.msk.f32.mxu0 %vm3372_vm1, %v3373_v4  ;;  %v1674_v52 = vand.u32 4294901760, %v1673_v50 }
 0x277   :  { %3234 = vmatprep.subr.bf16.mxu0 %v3371_v0  ;;  %v2178_v30 = vand.u32 4294901760, %v2177_v26 }
 0x278   :  { %v3247_v54 = vpack.c.bf16 %v1681_v53, %v1674_v52  ;;  %v2576_v53 = vld [vmem:[%s3708_s4 + $0x3] ss:$0 sm:$0xff] }
 0x279   :  { %v2179_v33 = vsub.f32 %v2177_v26, %v2178_v30 }
 0x27a   :  { %3236 = vmatpush3.bf16.msra.mxu0 %v3205_v60 }
 0x27b   :  { %3237 = vmatprep.subr.bf16.mxu0 %v3371_v0  ;;  %v2180_v35 = vand.u32 4294901760, %v2179_v33 }
 0x27d   :  { %2977 = vmatmul.mubr.f32.vlgmr.msra.gmra.mrb[2].mxu0 %v1146_v25  ;;  %v2170_v25 = vsub.f32 %v2574_v14, %v2082_v18 }
 0x27e   :  { %2987 = vmatprep.mubr.msk.f32.mxu0 %vm3372_vm1, %v3373_v4  ;;  %3239 = vmatpush3.bf16.msra.mxu0 %v3630_v36 }
 0x27f   :  { %3240 = vmatprep.subr.bf16.mxu0 %v3371_v0  ;;  %v2171_v29 = vand.u32 4294901760, %v2170_v25  ;;  %v3289_v40 = vpack.c.bf16 %v2177_v26, %v2170_v25 }
 0x281   :  { %v2172_v32 = vsub.f32 %v2170_v25, %v2171_v29  ;;  %v3301_v21 = vpack.c.bf16 %v2178_v30, %v2171_v29 }
 0x282   :  { %3242 = vmatpush3.bf16.msra.mxu0 %v3241_v43 }
 0x283   :  { %3243 = vmatprep.subr.bf16.mxu0 %v3371_v0  ;;  %v2173_v34 = vand.u32 4294901760, %v2172_v32 }
 0x350   :  { %v1558_v60 = vpop.f32.mrb[2].mxu0 }
 0x351   :  { %v3310_v61 = vadd.f32 %v2566_v59, %v1558_v60  ;;  %v2978_v62 = vpop.f32.mrb[3].mxu0 }
 0x353   :  { %3367 = vtanh.f32 %v3310_v61 }
 0x35d   :  { %v3368_v63 = vpop.eup %3367 }
 0x35e   :  { %v1574_v1 = vsel %vm1073_vm5, %v3368_v63, 0 }
 0x35f   :  { %v1645_v2 = vand.u32 4294901760, %v1574_v1 }
 0x361   :  { %v1646_v3 = vsub.f32 %v1574_v1, %v1645_v2 }
 0x363   :  { %v1647_v5 = vand.u32 4294901760, %v1646_v3 }
 0x365   :  { %v1648_v6 = vsub.f32 %v1646_v3, %v1647_v5 }
 0x367   :  { %v1649_v7 = vand.u32 4294901760, %v1648_v6 }
 0x369   :  { %2988 = vmatmul.mubr.f32.vlgmr.msra.gmra.mrb[4].mxu0 %v1649_v7 }
 0x36a   :  { %3245 = vmatpush3.bf16.msra.mxu0 %v3244_v47  ;;  %2998 = vmatprep.mubr.msk.f32.mxu0 %vm3372_vm1, %v3373_v4 }
 0x36b   :  { %3246 = vmatprep.subr.bf16.mxu0 %v3371_v0 }
 0x36e   :  { %3248 = vmatpush3.bf16.msra.mxu0 %v3247_v54 }
 0x36f   :  { %3249 = vmatprep.subr.bf16.mxu0 %v3371_v0 }
 0x371   :  { %2999 = vmatmul.mubr.f32.vlgmr.msra.gmra.mrb[4].mxu0 %v1645_v2 }
 0x372   :  { %3251 = vmatpush3.bf16.msra.mxu0 %v3250_v55  ;;  %3009 = vmatprep.mubr.msk.f32.mxu0 %vm3372_vm1, %v3373_v4 }
 0x373   :  { %3252 = vmatprep.subr.bf16.mxu0 %v3371_v0 }
 0x376   :  { %3254 = vmatpush3.bf16.msra.mxu0 %v3253_v56 }
 0x377   :  { %3255 = vmatprep.subr.bf16.mxu0 %v3371_v0 }
 0x379   :  { %3010 = vmatmul.mubr.f32.vlgmr.msra.gmra.mrb[4].mxu0 %v1646_v3 }
 0x37a   :  { %3257 = vmatpush3.bf16.msra.mxu0 %v3630_v36  ;;  %3020 = vmatprep.mubr.msk.f32.mxu0 %vm3372_vm1, %v3373_v4 }
 0x37b   :  { %3258 = vmatprep.subr.bf16.mxu0 %v3371_v0 }
 0x37e   :  { %3260 = vmatpush3.bf16.msra.mxu0 %v3241_v43 }
 0x37f   :  { %3261 = vmatprep.subr.bf16.mxu0 %v3371_v0 }
 0x381   :  { %3021 = vmatmul.mubr.f32.vlgmr.msra.gmra.mrb[4].mxu0 %v1647_v5 }
 0x382   :  { %3263 = vmatpush3.bf16.msra.mxu0 %v3262_v57  ;;  %3031 = vmatprep.mubr.msk.f32.mxu0 %vm3372_vm1, %v3373_v4 }
 0x383   :  { %3264 = vmatprep.subr.bf16.mxu0 %v3371_v0 }
 0x386   :  { %3266 = vmatpush3.bf16.msra.mxu0 %v3265_v58 }
 0x387   :  { %3267 = vmatprep.subr.bf16.mxu0 %v3371_v0 }
 0x389   :  { %3032 = vmatmul.mubr.f32.vlgmr.msra.gmra.mrb[4].mxu0 %v1645_v2 }
 0x38a   :  { %3269 = vmatpush3.bf16.msra.mxu0 %v3630_v36  ;;  %3042 = vmatprep.mubr.msk.f32.mxu0 %vm3372_vm1, %v3373_v4  ;;  %v3283_v36 = vpack.c.bf16 %v2180_v35, %v2173_v34 }
 0x38b   :  { %3270 = vmatprep.subr.bf16.mxu0 %v3371_v0 }
 0x38c   :  { %3284 = vmatpush3.bf16.msra.mxu1 %v3283_v36 }
 0x38d   :  { %3285 = vmatprep.subr.bf16.mxu1 %v3371_v0 }
 0x38e   :  { %3272 = vmatpush3.bf16.msra.mxu0 %v3241_v43 }
 0x38f   :  { %3273 = vmatprep.subr.bf16.mxu0 %v3371_v0 }
 0x391   :  { %3043 = vmatmul.mubr.f32.vlgmr.msra.gmra.mrb[4].mxu0 %v1645_v2 }
 0x392   :  { %3053 = vmatprep.mubr.msk.f32.mxu0 %vm3372_vm1, %v3373_v4  ;;  %3275 = vmatpush3.bf16.msra.mxu0 %v3274_v37 }
 0x393   :  { %3276 = vmatprep.subr.bf16.mxu0 %v3371_v0 }
 0x396   :  { %3278 = vmatpush3.bf16.msra.mxu0 %v3277_v39 }
 0x464   :  { %v2057_v43 = vpop.f32.mrb[4].mxu0 }
 0x465   :  { %v3311_v44 = vadd.f32 %v2571_v41, %v2057_v43  ;;  %v3044_v45 = vpop.f32.mrb[5].mxu0 }
 0x467   :  { %3369 = vtanh.f32 %v3311_v44 }
 0x471   :  { %v3370_v46 = vpop.eup %3369 }
 0x472   :  { %v2073_v48 = vsel %vm1073_vm5, %v3370_v46, 0 }
 0x473   :  { %v2144_v19 = vand.u32 4294901760, %v2073_v48 }
 0x475   :  { %v2145_v42 = vsub.f32 %v2073_v48, %v2144_v19  ;;  %3065 = vmatmul.mubr.f32.vlgmr.msra.gmra.mrb[2].mxu1 %v2144_v19 }
 0x476   :  { %3287 = vmatpush3.bf16.msra.mxu1 %v3286_v38  ;;  %3075 = vmatprep.mubr.msk.f32.mxu1 %vm3372_vm1, %v3373_v4 }
 0x477   :  { %3288 = vmatprep.subr.bf16.mxu1 %v3371_v0  ;;  %v2146_v49 = vand.u32 4294901760, %v2145_v42 }
 0x479   :  { %v2147_v47 = vsub.f32 %v2145_v42, %v2146_v49 }
 0x47a   :  { %3290 = vmatpush3.bf16.msra.mxu1 %v3289_v40 }
 0x47b   :  { %v2148_v50 = vand.u32 4294901760, %v2147_v47  ;;  %3291 = vmatprep.subr.bf16.mxu1 %v3371_v0 }
 0x47d   :  { %3054 = vmatmul.mubr.f32.vlgmr.msra.gmra.mrb[6].mxu0 %v2148_v50  ;;  %3076 = vmatmul.mubr.f32.vlgmr.msra.gmra.mrb[2].mxu1 %v2145_v42 }
 0x47e   :  { %3293 = vmatpush3.bf16.msra.mxu1 %v3274_v37  ;;  %3086 = vmatprep.mubr.msk.f32.mxu1 %vm3372_vm1, %v3373_v4 }
 0x47f   :  { %3294 = vmatprep.subr.bf16.mxu1 %v3371_v0 }
 0x482   :  { %3296 = vmatpush3.bf16.msra.mxu1 %v3277_v39 }
 0x483   :  { %3297 = vmatprep.subr.bf16.mxu1 %v3371_v0 }
 0x485   :  { %3087 = vmatmul.mubr.f32.vlgmr.msra.gmra.mrb[2].mxu1 %v2146_v49 }
 0x486   :  { %3299 = vmatpush3.bf16.msra.mxu1 %v3298_v20  ;;  %3097 = vmatprep.mubr.msk.f32.mxu1 %vm3372_vm1, %v3373_v4 }
 0x487   :  { %3300 = vmatprep.subr.bf16.mxu1 %v3371_v0 }
 0x48a   :  { %3302 = vmatpush3.bf16.msra.mxu1 %v3301_v21 }
 0x48b   :  { %3303 = vmatprep.subr.bf16.mxu1 %v3371_v0 }
 0x48d   :  { %3098 = vmatmul.mubr.f32.vlgmr.msra.gmra.mrb[2].mxu1 %v2144_v19 }
 0x48e   :  { %3305 = vmatpush3.bf16.msra.mxu1 %v3274_v37  ;;  %3108 = vmatprep.mubr.msk.f32.mxu1 %vm3372_vm1, %v3373_v4 }
 0x48f   :  { %3306 = vmatprep.subr.bf16.mxu1 %v3371_v0 }
 0x492   :  { %3308 = vmatpush3.bf16.msra.mxu1 %v3277_v39 }
 0x495   :  { %3109 = vmatmul.mubr.f32.vlgmr.msra.gmra.mrb[2].mxu1 %v2144_v19 }
 0x550   :  { %v2150_v51 = vpop.f32.mrb[6].mxu0 }
 0x551   :  { %v3055_v52 = vpop.f32.mrb[7].mxu0  ;;  %v2151_v54 = vadd.f32 %v2576_v53, %v2150_v51 }
 0x568   :  { %v2556_v55 = vpop.f32.mrb[2].mxu1 }
 0x569   :  { %v3313_v56 = vadd.f32 %v2556_v55, %v2151_v54  ;;  %v3110_v57 = vpop.f32.mrb[3].mxu1 }
 0x56b   :  { %2560 = vst.msk [vmem:[%s3709_s5] sm:$0xff] %vm1073_vm5, %v3313_v56 }

</bundles_post_ra>
